<compile_context>
chip_gen: v7x
topology: tpu7x:2x2x1
jax: 0.10.0
libtpu: 0.0.40
codegen_flags: <defaults>
</compile_context>

<pallas_src>
import jax
import jax.numpy as jnp
from jax.experimental import pallas as pl
from jax.experimental.pallas import tpu as pltpu

C = 64                  # Self_Attn in_dim (stand-in for 2048)
C8 = C // 8             # query/key channels
WF, HF = 7, 8           # feature-map spatial size (width, height)
N = WF * HF             # flattened spatial positions, n = w*HF + h
POOL_K = 7              # nn.AvgPool2d(7, stride=1) -> output (1, 2)
P = 2                   # pooled spatial positions
OUT_FEATURES = 125      # nn.Linear(2*C, 125)
OUT_PAD = 128           # lane-dense padded FC output (sliced to 125 outside)
IMG_C, PATCH = 3, 4
PATCH_DIM = IMG_C * PATCH * PATCH    # 48
STEM_IN = 64            # patch feature dim 48 zero-padded to 64 (bf16)
QKV_OUT = 2 * C8 + C    # 80  (q | k | v columns)
QKV_PAD = 128           # lane-dense fused QKV output width
IMG_W, IMG_H = WF * PATCH, HF * PATCH   # 28 x 32 input image


# ------------------------------ fused kernel ---------------------------------

def _fused_kernel(patches_ref, wstem_ref, bstem_ref, wqkv_ref, bqkv_ref,
                  gamma_ref, pmT_ref, wfc_ref, bfc_ref,
                  logits_ref, feat_ref):
    bf16 = jnp.bfloat16
    tb = patches_ref.shape[0]                       # batch elements in this block

    # --- stem: patchified 4x4 conv (== matmul) + ReLU -> (tb*N, C) f32
    patches = patches_ref[...].reshape(tb * N, STEM_IN)
    x = jnp.dot(patches, wstem_ref[...], preferred_element_type=jnp.float32)
    x = jnp.maximum(x + bstem_ref[...], 0.0)
    x_bf = x.astype(bf16)

    # --- fused Q|K|V 1x1-conv projections: one lane-dense 128-wide matmul
    qkv = jnp.dot(x_bf, wqkv_ref[...],
                  preferred_element_type=jnp.float32) + bqkv_ref[...]
    q = qkv[:, :C8].reshape(tb, N, C8).astype(bf16)
    k = qkv[:, C8:2 * C8].reshape(tb, N, C8).astype(bf16)
    v = qkv[:, 2 * C8:QKV_OUT].reshape(tb, N, C).astype(bf16)

    # --- attention: energy[b,i,j] = <q_i, k_j>, softmax over j
    energy = jnp.einsum('bid,bjd->bij', q, k,
                        preferred_element_type=jnp.float32)          # (tb, N, N)
    m = jnp.max(energy, axis=-1, keepdims=True)
    e = jnp.exp(energy - m)
    attn = e * pl.reciprocal(jnp.sum(e, axis=-1, keepdims=True), approx=True)

    # --- AvgPool2d(7,1) hoisted through the attention output:
    #     feat[b,p,:] = 1/49 * ( gamma * ((M^T attn) @ v)[b,p,:] + (M^T x)[b,p,:] )
    mT = jnp.broadcast_to(pmT_ref[...][None], (tb, P, N))            # binary masks, bf16
    pooled_attn = jnp.einsum('bpn,bnj->bpj', mT, attn.astype(bf16),
                             preferred_element_type=jnp.float32)     # (tb, P, N)
    av = jnp.einsum('bpj,bjc->bpc', pooled_attn.astype(bf16), v,
                    preferred_element_type=jnp.float32)              # (tb, P, C)
    px = jnp.einsum('bpn,bnc->bpc', mT, x_bf.reshape(tb, N, C),
                    preferred_element_type=jnp.float32)              # (tb, P, C)

    gamma = gamma_ref[0, 0]                                          # SMEM scalar
    feat = (gamma * av + px) * (1.0 / (POOL_K * POOL_K))             # (tb, P, C) f32

    feat2d = jnp.concatenate([feat[:, 0, :], feat[:, 1, :]], axis=-1)  # (tb, 2C) p-major
    feat_ref[...] = feat2d.reshape(tb, 1, P * C)

    # --- FC head (bf16 operands, f32 accumulate), lane-dense padded 125 -> 128
    logits = jnp.dot(feat2d.astype(bf16), wfc_ref[...],
                     preferred_element_type=jnp.float32) + bfc_ref[...]
    logits_ref[...] = logits.reshape(tb, 1, OUT_PAD)


# -------------------------------- wrapper ------------------------------------

def resnet50_attn_single_forward(x, params, *, batch_block=1):
    """x: NCHW image (B, 3, 28, 32) -> (logits (B,125), attn_feature (B, 2*C))."""
    B = x.shape[0]
    assert B % batch_block == 0
    # patchify: n = w*HF + h; pad patch features 48 -> 64 and cast to bf16 in one go
    xp = x.reshape(B, IMG_C, WF, PATCH, HF, PATCH).transpose(0, 2, 4, 1, 3, 5)
    patches = xp.reshape(B, N, PATCH_DIM)
    patches = jnp.pad(patches, ((0, 0), (0, 0), (0, STEM_IN - PATCH_DIM))
                      ).astype(jnp.bfloat16)

    tb = batch_block

    def full(shape):
        return pl.BlockSpec(shape, lambda b: (0,) * len(shape))

    logits_pad, feat_pm = pl.pallas_call(
        _fused_kernel,
        grid=(B // tb,),
        in_specs=[
            pl.BlockSpec((tb, N, STEM_IN), lambda b: (b, 0, 0)),   # patches
            full((STEM_IN, C)), full((1, C)),                      # stem weight / bias
            full((C, QKV_PAD)), full((1, QKV_PAD)),                # fused QKV weight / bias
            pl.BlockSpec((1, 1), lambda b: (0, 0),
                         memory_space=pltpu.MemorySpace.SMEM),     # gamma (scalar)
            full((P, N)),                                          # binary pooling masks
            full((P * C, OUT_PAD)), full((1, OUT_PAD)),            # fc weight / bias
        ],
        out_specs=(
            pl.BlockSpec((tb, 1, OUT_PAD), lambda b: (b, 0, 0)),
            pl.BlockSpec((tb, 1, P * C), lambda b: (b, 0, 0)),
        ),
        out_shape=(
            jax.ShapeDtypeStruct((B, 1, OUT_PAD), jnp.float32),    # padded logits
            jax.ShapeDtypeStruct((B, 1, P * C), jnp.float32),      # pooled feature (p-major)
        ),
        compiler_params=pltpu.CompilerParams(
            dimension_semantics=("parallel",)),
    )(patches, params["w_stem"], params["b_stem"], params["wqkv"], params["bqkv"],
      params["gamma"], params["pool_masks"], params["wfc"], params["bfc"])

    logits = logits_pad[:, 0, :OUT_FEATURES]
    # kernel emits pooled feature p-major (p*C + c); reorder to PyTorch's channel-major
    # flatten order (c*P + p) for the returned attn_feature.
    attn_feature = feat_pm[:, 0, :].reshape(B, P, C).transpose(0, 2, 1).reshape(B, C * P)
    return logits, attn_feature


# ------------------------------ parameters -----------------------------------

def init_raw_params(key):
    ks = jax.random.split(key, 10)
    s = 0.05
    f32 = jnp.float32
    return dict(
        w_stem=jax.random.normal(ks[0], (PATCH_DIM, C), f32) * s,
        b_stem=jax.random.normal(ks[1], (C,), f32) * s,
        wq=jax.random.normal(ks[2], (C8, C), f32) * s,
        bq=jax.random.normal(ks[3], (C8,), f32) * s,
        wk=jax.random.normal(ks[4], (C8, C), f32) * s,
        bk=jax.random.normal(ks[5], (C8,), f32) * s,
        wv=jax.random.normal(ks[6], (C, C), f32) * s,
        bv=jax.random.normal(ks[7], (C,), f32) * s,
        wfc=jax.random.normal(ks[8], (OUT_FEATURES, C * P), f32) * s,
        bfc=jax.random.normal(ks[9], (OUT_FEATURES,), f32) * s,
        # PyTorch inits gamma to 0; nonzero so the attention path contributes here.
        gamma=jnp.float32(0.25),
    )


def pack_params(raw):
    f32, bf16 = jnp.float32, jnp.bfloat16

    # binary 7x7 pooling masks over n = w*HF + h (exact in bf16); 1/49 applied in-kernel
    h_idx = jnp.arange(N) % HF
    m0 = (h_idx < POOL_K)
    m1 = (h_idx >= HF - POOL_K)
    pool_masks = jnp.stack([m0, m1], axis=0).astype(bf16)                     # (P, N)

    w_stem = jnp.pad(raw["w_stem"], ((0, STEM_IN - PATCH_DIM), (0, 0))).astype(bf16)

    # fused Q|K|V weight (x_nc @ W^T layout), padded to a lane-dense 128-wide result
    wqkv = jnp.concatenate([raw["wq"].T, raw["wk"].T, raw["wv"].T], axis=1)   # (C, 80)
    wqkv = jnp.pad(wqkv, ((0, 0), (0, QKV_PAD - QKV_OUT))).astype(bf16)
    bqkv = jnp.concatenate([raw["bq"], raw["bk"], raw["bv"]])[None]
    bqkv = jnp.pad(bqkv, ((0, 0), (0, QKV_PAD - QKV_OUT))).astype(f32)

    # fc: PyTorch columns are c*P + p; reorder to the kernel's p-major (p*C + c),
    # transpose for feat @ W, pad output 125 -> 128 lanes, store bf16.
    wfc_pm = raw["wfc"].reshape(OUT_FEATURES, C, P).transpose(2, 1, 0)
    wfc_pm = wfc_pm.reshape(P * C, OUT_FEATURES)
    wfc = jnp.pad(wfc_pm, ((0, 0), (0, OUT_PAD - OUT_FEATURES))).astype(bf16)
    bfc = jnp.pad(raw["bfc"][None], ((0, 0), (0, OUT_PAD - OUT_FEATURES))).astype(f32)

    return dict(
        w_stem=w_stem, b_stem=raw["b_stem"][None].astype(f32),
        wqkv=wqkv, bqkv=bqkv,
        gamma=jnp.reshape(raw["gamma"], (1, 1)).astype(f32),
        pool_masks=pool_masks,
        wfc=wfc, bfc=bfc,
    )


# --------------------------- pure-JAX reference -------------------------------

def reference_forward(x, raw):
    B = x.shape[0]
    xp = x.reshape(B, IMG_C, WF, PATCH, HF, PATCH).transpose(0, 2, 4, 1, 3, 5)
    xp = xp.reshape(B, N, PATCH_DIM)
    fm = jnp.maximum(jnp.einsum('bnk,kc->bnc', xp, raw["w_stem"]) + raw["b_stem"], 0.0)
    q = jnp.einsum('bnc,dc->bnd', fm, raw["wq"]) + raw["bq"]
    k = jnp.einsum('bnc,dc->bnd', fm, raw["wk"]) + raw["bk"]
    v = jnp.einsum('bnc,dc->bnd', fm, raw["wv"]) + raw["bv"]
    energy = jnp.einsum('bid,bjd->bij', q, k)
    attn = jax.nn.softmax(energy, axis=-1)
    out = raw["gamma"] * jnp.einsum('bij,bjc->bic', attn, v) + fm             # (B,N,C)
    om = out.reshape(B, WF, HF, C)
    p0 = jnp.mean(om[:, :, 0:POOL_K, :], axis=(1, 2))                          # (B,C)
    p1 = jnp.mean(om[:, :, HF - POOL_K:HF, :], axis=(1, 2))
    attn_feature = jnp.stack([p0, p1], axis=-1).reshape(B, C * P)              # c*P + p
    logits = attn_feature @ raw["wfc"].T + raw["bfc"]
    return logits, attn_feature


if __name__ == "__main__":
    key = jax.random.PRNGKey(0)
    pkey, xkey = jax.random.split(key)
    raw = init_raw_params(pkey)
    params = pack_params(raw)
    x = jax.random.normal(xkey, (2, IMG_C, IMG_W, IMG_H), dtype=jnp.float32)

    logits, attn_feature = jax.jit(resnet50_attn_single_forward)(x, params)
    jax.block_until_ready((logits, attn_feature))

    assert logits.shape == (2, OUT_FEATURES)
    assert attn_feature.shape == (2, C * P)
    assert bool(jnp.all(jnp.isfinite(logits)))
    assert bool(jnp.all(jnp.isfinite(attn_feature)))

    ref_logits, ref_feat = reference_forward(x, raw)
    assert bool(jnp.allclose(logits, ref_logits, rtol=1e-1, atol=3e-2)), \
        "logits mismatch vs f32 reference"
    assert bool(jnp.allclose(attn_feature, ref_feat, rtol=1e-1, atol=3e-2)), \
        "attn_feature mismatch vs f32 reference"

    print("KERNEL_OK")
</pallas_src>

<mosaic_0001>
module attributes {stable_mosaic.version = 11 : i64} {
  func.func @_fused_kernel(%arg0: i32, %arg1: memref<1x56x64xbf16, #tpu.memory_space<vmem>>, %arg2: memref<64x64xbf16, #tpu.memory_space<vmem>>, %arg3: memref<1x64xf32, #tpu.memory_space<vmem>>, %arg4: memref<64x128xbf16, #tpu.memory_space<vmem>>, %arg5: memref<1x128xf32, #tpu.memory_space<vmem>>, %arg6: memref<1x1xf32, #tpu.memory_space<smem>>, %arg7: memref<2x56xbf16, #tpu.memory_space<vmem>>, %arg8: memref<128x128xbf16, #tpu.memory_space<vmem>>, %arg9: memref<1x128xf32, #tpu.memory_space<vmem>>, %arg10: memref<1x1x128xf32, #tpu.memory_space<vmem>>, %arg11: memref<1x1x128xf32, #tpu.memory_space<vmem>>) attributes {dimension_semantics = [#tpu.dimension_semantics<parallel>], iteration_bounds = array<i64: 2>, scalar_prefetch = 0 : i64, scratch_operands = 0 : i64, tpu.core_type = #tpu.core_type<tc>, window_params = [{transform_indices = @transform_0, window_bounds = array<i64: 1, 56, 64>}, {pipeline_mode = #tpu.pipeline_mode<synchronous>, transform_indices = @transform_1, window_bounds = array<i64: 64, 64>}, {pipeline_mode = #tpu.pipeline_mode<synchronous>, transform_indices = @transform_2, window_bounds = array<i64: 1, 64>}, {pipeline_mode = #tpu.pipeline_mode<synchronous>, transform_indices = @transform_3, window_bounds = array<i64: 64, 128>}, {pipeline_mode = #tpu.pipeline_mode<synchronous>, transform_indices = @transform_4, window_bounds = array<i64: 1, 128>}, {transform_indices = @transform_5, window_bounds = array<i64: 1, 1>}, {pipeline_mode = #tpu.pipeline_mode<synchronous>, transform_indices = @transform_6, window_bounds = array<i64: 2, 56>}, {pipeline_mode = #tpu.pipeline_mode<synchronous>, transform_indices = @transform_7, window_bounds = array<i64: 128, 128>}, {pipeline_mode = #tpu.pipeline_mode<synchronous>, transform_indices = @transform_8, window_bounds = array<i64: 1, 128>}, {transform_indices = @transform_9, window_bounds = array<i64: 1, 1, 128>}, {transform_indices = @transform_10, window_bounds = array<i64: 1, 1, 128>}]} {
    %c0 = arith.constant 0 : index
    %c0_0 = arith.constant 0 : index
    %c0_1 = arith.constant 0 : index
    %0 = vector.load %arg1[%c0, %c0_0, %c0_1] : memref<1x56x64xbf16, #tpu.memory_space<vmem>>, vector<1x56x64xbf16>
    %1 = vector.shape_cast %0 : vector<1x56x64xbf16> to vector<56x64xbf16>
    %c0_2 = arith.constant 0 : index
    %c0_3 = arith.constant 0 : index
    %2 = vector.load %arg2[%c0_2, %c0_3] : memref<64x64xbf16, #tpu.memory_space<vmem>>, vector<64x64xbf16>
    %cst = arith.constant dense<0.000000e+00> : vector<56x64xf32>
    %3 = tpu.matmul %1, %2, %cst {dimension_numbers = #tpu.dot_dimension_numbers<[1], [0], [0], [1], [0, 0, 1, 1], [], []>} : vector<56x64xbf16>, vector<64x64xbf16>, vector<56x64xf32> -> vector<56x64xf32>
    %c0_4 = arith.constant 0 : index
    %c0_5 = arith.constant 0 : index
    %4 = vector.load %arg3[%c0_4, %c0_5] : memref<1x64xf32, #tpu.memory_space<vmem>>, vector<1x64xf32>
    %5 = vector.broadcast %4 : vector<1x64xf32> to vector<56x64xf32>
    %6 = arith.addf %3, %5 : vector<56x64xf32>
    %cst_6 = arith.constant 0.000000e+00 : f32
    %7 = vector.broadcast %cst_6 : f32 to vector<56x64xf32>
    %8 = arith.maximumf %6, %7 : vector<56x64xf32>
    %9 = arith.truncf %8 : vector<56x64xf32> to vector<56x64xbf16>
    %c0_7 = arith.constant 0 : index
    %c0_8 = arith.constant 0 : index
    %10 = vector.load %arg4[%c0_7, %c0_8] : memref<64x128xbf16, #tpu.memory_space<vmem>>, vector<64x128xbf16>
    %cst_9 = arith.constant dense<0.000000e+00> : vector<56x128xf32>
    %11 = tpu.matmul %9, %10, %cst_9 {dimension_numbers = #tpu.dot_dimension_numbers<[1], [0], [0], [1], [0, 0, 1, 1], [], []>} : vector<56x64xbf16>, vector<64x128xbf16>, vector<56x128xf32> -> vector<56x128xf32>
    %c0_10 = arith.constant 0 : index
    %c0_11 = arith.constant 0 : index
    %12 = vector.load %arg5[%c0_10, %c0_11] : memref<1x128xf32, #tpu.memory_space<vmem>>, vector<1x128xf32>
    %13 = vector.broadcast %12 : vector<1x128xf32> to vector<56x128xf32>
    %14 = arith.addf %11, %13 : vector<56x128xf32>
    %15 = vector.extract_strided_slice %14 {offsets = [0, 0], sizes = [56, 8], strides = [1, 1]} : vector<56x128xf32> to vector<56x8xf32>
    %16 = vector.shape_cast %15 : vector<56x8xf32> to vector<1x56x8xf32>
    %17 = arith.truncf %16 : vector<1x56x8xf32> to vector<1x56x8xbf16>
    %18 = vector.extract_strided_slice %14 {offsets = [0, 8], sizes = [56, 8], strides = [1, 1]} : vector<56x128xf32> to vector<56x8xf32>
    %19 = vector.shape_cast %18 : vector<56x8xf32> to vector<1x56x8xf32>
    %20 = arith.truncf %19 : vector<1x56x8xf32> to vector<1x56x8xbf16>
    %21 = vector.extract_strided_slice %14 {offsets = [0, 16], sizes = [56, 64], strides = [1, 1]} : vector<56x128xf32> to vector<56x64xf32>
    %22 = vector.shape_cast %21 : vector<56x64xf32> to vector<1x56x64xf32>
    %23 = arith.truncf %22 : vector<1x56x64xf32> to vector<1x56x64xbf16>
    "tpu.trace_start"() <{level = 10 : i32, message = "bid,bjd->bij"}> : () -> ()
    %cst_12 = arith.constant dense<0.000000e+00> : vector<1x56x56xf32>
    %24 = tpu.matmul %17, %20, %cst_12 {dimension_numbers = #tpu.dot_dimension_numbers<[2], [2], [1], [1], [0, 0, 0, 1, 1, 1], [0], [0]>} : vector<1x56x8xbf16>, vector<1x56x8xbf16>, vector<1x56x56xf32> -> vector<1x56x56xf32>
    "tpu.trace_stop"() : () -> ()
    %cst_13 = arith.constant dense<0xFF800000> : vector<1x56xf32>
    %25 = vector.multi_reduction <maximumf>, %24, %cst_13 [2] : vector<1x56x56xf32> to vector<1x56xf32>
    %26 = vector.shape_cast %25 : vector<1x56xf32> to vector<1x56x1xf32>
    %27 = vector.broadcast %26 : vector<1x56x1xf32> to vector<1x56x56xf32>
    %28 = arith.subf %24, %27 : vector<1x56x56xf32>
    %29 = math.exp %28 : vector<1x56x56xf32>
    %cst_14 = arith.constant dense<0.000000e+00> : vector<1x56xf32>
    %30 = vector.multi_reduction <add>, %29, %cst_14 [2] : vector<1x56x56xf32> to vector<1x56xf32>
    %31 = vector.shape_cast %30 : vector<1x56xf32> to vector<1x56x1xf32>
    %32 = tpu.reciprocal %31 {approx = true} : vector<1x56x1xf32> -> vector<1x56x1xf32>
    %33 = vector.broadcast %32 : vector<1x56x1xf32> to vector<1x56x56xf32>
    %34 = arith.mulf %29, %33 : vector<1x56x56xf32>
    %c0_15 = arith.constant 0 : index
    %c0_16 = arith.constant 0 : index
    %35 = vector.load %arg7[%c0_15, %c0_16] : memref<2x56xbf16, #tpu.memory_space<vmem>>, vector<2x56xbf16>
    %36 = vector.shape_cast %35 : vector<2x56xbf16> to vector<1x2x56xbf16>
    %37 = arith.truncf %34 : vector<1x56x56xf32> to vector<1x56x56xbf16>
    "tpu.trace_start"() <{level = 10 : i32, message = "bpn,bnj->bpj"}> : () -> ()
    %cst_17 = arith.constant dense<0.000000e+00> : vector<1x2x56xf32>
    %38 = tpu.matmul %36, %37, %cst_17 {dimension_numbers = #tpu.dot_dimension_numbers<[2], [1], [1], [2], [0, 0, 0, 1, 1, 2], [0], [0]>} : vector<1x2x56xbf16>, vector<1x56x56xbf16>, vector<1x2x56xf32> -> vector<1x2x56xf32>
    "tpu.trace_stop"() : () -> ()
    %39 = arith.truncf %38 : vector<1x2x56xf32> to vector<1x2x56xbf16>
    "tpu.trace_start"() <{level = 10 : i32, message = "bpj,bjc->bpc"}> : () -> ()
    %cst_18 = arith.constant dense<0.000000e+00> : vector<1x2x64xf32>
    %40 = tpu.matmul %39, %23, %cst_18 {dimension_numbers = #tpu.dot_dimension_numbers<[2], [1], [1], [2], [0, 0, 0, 1, 1, 2], [0], [0]>} : vector<1x2x56xbf16>, vector<1x56x64xbf16>, vector<1x2x64xf32> -> vector<1x2x64xf32>
    "tpu.trace_stop"() : () -> ()
    %41 = vector.shape_cast %9 : vector<56x64xbf16> to vector<1x56x64xbf16>
    "tpu.trace_start"() <{level = 10 : i32, message = "bpn,bnc->bpc"}> : () -> ()
    %cst_19 = arith.constant dense<0.000000e+00> : vector<1x2x64xf32>
    %42 = tpu.matmul %36, %41, %cst_19 {dimension_numbers = #tpu.dot_dimension_numbers<[2], [1], [1], [2], [0, 0, 0, 1, 1, 2], [0], [0]>} : vector<1x2x56xbf16>, vector<1x56x64xbf16>, vector<1x2x64xf32> -> vector<1x2x64xf32>
    "tpu.trace_stop"() : () -> ()
    %c0_20 = arith.constant 0 : index
    %c0_21 = arith.constant 0 : index
    %43 = memref.load %arg6[%c0_20, %c0_21] : memref<1x1xf32, #tpu.memory_space<smem>>
    %44 = vector.broadcast %43 : f32 to vector<1x2x64xf32>
    %45 = arith.mulf %44, %40 : vector<1x2x64xf32>
    %46 = arith.addf %45, %42 : vector<1x2x64xf32>
    %cst_22 = arith.constant 0.0204081628 : f32
    %47 = vector.broadcast %cst_22 : f32 to vector<1x2x64xf32>
    %48 = arith.mulf %46, %47 : vector<1x2x64xf32>
    %49 = vector.extract_strided_slice %48 {offsets = [0, 0, 0], sizes = [1, 1, 64], strides = [1, 1, 1]} : vector<1x2x64xf32> to vector<1x1x64xf32>
    %50 = vector.shape_cast %49 : vector<1x1x64xf32> to vector<1x64xf32>
    %51 = vector.extract_strided_slice %48 {offsets = [0, 1, 0], sizes = [1, 1, 64], strides = [1, 1, 1]} : vector<1x2x64xf32> to vector<1x1x64xf32>
    %52 = vector.shape_cast %51 : vector<1x1x64xf32> to vector<1x64xf32>
    %53 = tpu.concatenate %50, %52 in 1 : vector<1x64xf32>, vector<1x64xf32> -> vector<1x128xf32>
    %54 = vector.shape_cast %53 : vector<1x128xf32> to vector<1x1x128xf32>
    %c0_23 = arith.constant 0 : index
    %c0_24 = arith.constant 0 : index
    %c0_25 = arith.constant 0 : index
    %55 = vector.load %arg11[%c0_23, %c0_24, %c0_25] : memref<1x1x128xf32, #tpu.memory_space<vmem>>, vector<1x1x128xf32>
    tpu.vector_store %arg11[%c0_23, %c0_24, %c0_25], %54 {strides = array<i32>} : memref<1x1x128xf32, #tpu.memory_space<vmem>>, vector<1x1x128xf32>,
    %56 = arith.truncf %53 : vector<1x128xf32> to vector<1x128xbf16>
    %c0_26 = arith.constant 0 : index
    %c0_27 = arith.constant 0 : index
    %57 = vector.load %arg8[%c0_26, %c0_27] : memref<128x128xbf16, #tpu.memory_space<vmem>>, vector<128x128xbf16>
    %cst_28 = arith.constant dense<0.000000e+00> : vector<1x128xf32>
    %58 = tpu.matmul %56, %57, %cst_28 {dimension_numbers = #tpu.dot_dimension_numbers<[1], [0], [0], [1], [0, 0, 1, 1], [], []>} : vector<1x128xbf16>, vector<128x128xbf16>, vector<1x128xf32> -> vector<1x128xf32>
    %c0_29 = arith.constant 0 : index
    %c0_30 = arith.constant 0 : index
    %59 = vector.load %arg9[%c0_29, %c0_30] : memref<1x128xf32, #tpu.memory_space<vmem>>, vector<1x128xf32>
    %60 = arith.addf %58, %59 : vector<1x128xf32>
    %61 = vector.shape_cast %60 : vector<1x128xf32> to vector<1x1x128xf32>
    %c0_31 = arith.constant 0 : index
    %c0_32 = arith.constant 0 : index
    %c0_33 = arith.constant 0 : index
    %62 = vector.load %arg10[%c0_31, %c0_32, %c0_33] : memref<1x1x128xf32, #tpu.memory_space<vmem>>, vector<1x1x128xf32>
    tpu.vector_store %arg10[%c0_31, %c0_32, %c0_33], %61 {strides = array<i32>} : memref<1x1x128xf32, #tpu.memory_space<vmem>>, vector<1x1x128xf32>,
    return
  }
  func.func @transform_0(%arg0: i32) -> (i32, i32, i32) {
    %c0_i32 = arith.constant 0 : i32
    %c0_i32_0 = arith.constant 0 : i32
    %c0_i32_1 = arith.constant 0 : i32
    return %arg0, %c0_i32, %c0_i32_0 : i32, i32, i32
  }
  func.func @transform_1(%arg0: i32) -> (i32, i32) {
    %c0_i32 = arith.constant 0 : i32
    %c0_i32_0 = arith.constant 0 : i32
    %c0_i32_1 = arith.constant 0 : i32
    return %c0_i32, %c0_i32_0 : i32, i32
  }
  func.func @transform_2(%arg0: i32) -> (i32, i32) {
    %c0_i32 = arith.constant 0 : i32
    %c0_i32_0 = arith.constant 0 : i32
    %c0_i32_1 = arith.constant 0 : i32
    return %c0_i32, %c0_i32_0 : i32, i32
  }
  func.func @transform_3(%arg0: i32) -> (i32, i32) {
    %c0_i32 = arith.constant 0 : i32
    %c0_i32_0 = arith.constant 0 : i32
    %c0_i32_1 = arith.constant 0 : i32
    return %c0_i32, %c0_i32_0 : i32, i32
  }
  func.func @transform_4(%arg0: i32) -> (i32, i32) {
    %c0_i32 = arith.constant 0 : i32
    %c0_i32_0 = arith.constant 0 : i32
    %c0_i32_1 = arith.constant 0 : i32
    return %c0_i32, %c0_i32_0 : i32, i32
  }
  func.func @transform_5(%arg0: i32) -> (i32, i32) {
    %c0_i32 = arith.constant 0 : i32
    %c0_i32_0 = arith.constant 0 : i32
    %c0_i32_1 = arith.constant 0 : i32
    return %c0_i32, %c0_i32_0 : i32, i32
  }
  func.func @transform_6(%arg0: i32) -> (i32, i32) {
    %c0_i32 = arith.constant 0 : i32
    %c0_i32_0 = arith.constant 0 : i32
    %c0_i32_1 = arith.constant 0 : i32
    return %c0_i32, %c0_i32_0 : i32, i32
  }
  func.func @transform_7(%arg0: i32) -> (i32, i32) {
    %c0_i32 = arith.constant 0 : i32
    %c0_i32_0 = arith.constant 0 : i32
    %c0_i32_1 = arith.constant 0 : i32
    return %c0_i32, %c0_i32_0 : i32, i32
  }
  func.func @transform_8(%arg0: i32) -> (i32, i32) {
    %c0_i32 = arith.constant 0 : i32
    %c0_i32_0 = arith.constant 0 : i32
    %c0_i32_1 = arith.constant 0 : i32
    return %c0_i32, %c0_i32_0 : i32, i32
  }
  func.func @transform_9(%arg0: i32) -> (i32, i32, i32) {
    %c0_i32 = arith.constant 0 : i32
    %c0_i32_0 = arith.constant 0 : i32
    %c0_i32_1 = arith.constant 0 : i32
    return %arg0, %c0_i32, %c0_i32_0 : i32, i32, i32
  }
  func.func @transform_10(%arg0: i32) -> (i32, i32, i32) {
    %c0_i32 = arith.constant 0 : i32
    %c0_i32_0 = arith.constant 0 : i32
    %c0_i32_1 = arith.constant 0 : i32
    return %arg0, %c0_i32, %c0_i32_0 : i32, i32, i32
  }
}

</mosaic_0001>

<bundles_post_ra>
// kernel: squeeze.3
= control target key start
LH: loop header
LB: loop body
LE: loop exit
PB: predicated region body
PF: predicated region fallthrough
CT: control target
= control target key end

     0   :  { %vm7_vm0 = vcmask 523264   ;;  %s48_s0 = inlined_call_operand.vmem [shape: f32[2,128], index: 0, kind: input, shape index: {}]   ;;  %s49_s1 = inlined_call_operand.vmem [shape: f32[2,2,64], index: 1, kind: output, shape index: {}]  }
   0x1   :  { %v4_v0 = vld [vmem:[%s48_s0] sm:$0x3]  ;;  %s28_s0 = smov 64  }
   0x2   :  { %5 = vst [vmem:[#allocation1] sm:$0x3] %v4_v0 }
   0x9   :  { %v9_v1 = vld [vmem:[#allocation1] sm:$0x3]  }
   0xa   :  { %v6_v2 = vld [vmem:[#allocation1] sm:$0x3]   ;;  %10 = vrot.lane.b32.xlu0 %v9_v1, %s28_s0 }
   0xb   :  { %8 = vst.msk [vmem:[#allocation0] ss:$8 sm:$0x3] %vm7_vm0, %v6_v2  }
  0x7c   :  { %v11_v3 = vpop.permute.xlu0 %10  }
  0x7d   :  { %14 = vst.msk [vmem:[#allocation0 + $0x1] ss:$8 sm:$0x3] %vm7_vm0, %v11_v3  }
  0x84   :  { %v18_v4 = vld [vmem:[#allocation0] sm:$0x3]  ;;  %v22_v5 = vld [vmem:[#allocation0 + $0x8] sm:$0x3] }
  0x85   :  { %20 = vst [vmem:[%s49_s1] sm:$0x3] %v18_v4  ;;  %26 = vst [vmem:[%s49_s1 + $0x2] sm:$0x3] %v22_v5 }

// kernel: resnet50_attn_single_forward.1
= control target key start
LH: loop header
LB: loop body
LE: loop exit
PB: predicated region body
PF: predicated region fallthrough
CT: control target
= control target key end

     0   :  { %s1868_s0 = inlined_call_operand.vmem [shape: bf16[2,56,64], index: 0, kind: input, shape index: {}]   ;;  %s1869_s1 = inlined_call_operand.vmem [shape: bf16[64,64], index: 1, kind: input, shape index: {}]   ;;  %s1870_s2 = inlined_call_operand.vmem [shape: f32[1,64], index: 2, kind: input, shape index: {}]   ;;  %s1871_s3 = inlined_call_operand.vmem [shape: bf16[64,128], index: 3, kind: input, shape index: {}]   ;;  %s1872_s4 = inlined_call_operand.vmem [shape: f32[1,128], index: 4, kind: input, shape index: {}]   ;;  %s1873_s5 = inlined_call_operand.<no memory space> [shape: f32[1,1], index: 5, kind: input, shape index: {}]   ;;  %s1874_s6 = inlined_call_operand.vmem [shape: bf16[2,56], index: 6, kind: input, shape index: {}]   ;;  %s1875_s7 = inlined_call_operand.vmem [shape: bf16[128,128], index: 7, kind: input, shape index: {}]   ;;  %s1876_s8 = inlined_call_operand.vmem [shape: f32[1,128], index: 8, kind: input, shape index: {}]   ;;  %s1877_s9 = inlined_call_operand.hbm [shape: f32[2,1,128], index: 9, kind: output, shape index: {0}]   ;;  %s1878_s10 = inlined_call_operand.vmem [shape: f32[2,1,128], index: 10, kind: output, shape index: {1}]  }
   0x1   :  { %16 = sst [smem:[#allocation2]] %s1873_s5 }
   0x2   :  { %17 = vsyncpa [#allocation4], 0 }
   0x3   :  { %19 = vsyncpa [#allocation4 + $0x1], 0  ;;  %s1604_s15 = smov 0   ;;  %s1606_s16 = smov 0  }
   0x4   :  { %s1608_s17 = smov 0   ;;  %s1610_s18 = smov 0  }
   0x5 LB: > { %s1625_s5 = sadd.s32 4294967295, %s1538_s18   ;;  %s1182_s19 = sadd.s32 4294967294, %s1538_s18   ;;  %s1538_s18 = sphi %s1610_s18, %s1884_s18   ;;  %s1534_s17 = sphi %s1608_s17, %s1883_s17   ;;  %s1530_s16 = sphi %s1606_s16, %s1882_s16   ;;  %s1526_s15 = sphi %s1604_s15, %s1881_s15  }
   0x6   : > { %s1629_s20 = sadd.s32 1, %s1538_s18   ;;  %s226_s21 = sadd.s32 1, %s1534_s17 }
   0x7   : > { %s223_s22 = ssub.s32 %s1538_s18, %s1629_s20  ;;  %p236_p0 = scmp.ne.s32.totalorder %s1534_s17, %s1530_s16 }
   0x8   : > { %p224_p1 = scmp.eq.s32.totalorder %s223_s22, 0  ;;  %p237_p2 = scmp.eq.s32.totalorder %s1625_s5, 1 }
   0x9   : > { %p242_p3 = scmp.ne.s32.totalorder %s1530_s16, %s1526_s15  ;;  %p243_p4 = scmp.eq.s32.totalorder %s1182_s19, 1 }
   0xa   : > { %s1640_s23 = scalar_select %p224_p1, %s1534_s17, %s226_s21  }
   0xb   : > { %p1642_p5 = por %p237_p2, %p236_p0  ;;  %p1646_p6 = por %p243_p4, %p242_p3 }
   0xc   : > { %p1185_p7 = scmp.ge.s32.totalorder %s1538_s18, 1  ;;  %p319_p8 = scmp.lt.s32.totalorder %s1538_s18, 3 }
   0xe   : > { %p320_p9 = pnand %p1185_p7, %p319_p8 }
   0xf   : > { %v1428_v0 = vld [vmem:[%s1869_s1] sm:$0xff] (!%p320_p9)   ;;  %p359_p10 = scmp.lt.s32.totalorder (!%p320_p9), %s1625_s5, 1  ;;  %v1429_v1 = vld [vmem:[%s1869_s1 + $0x8] sm:$0xff] (!%p320_p9)   ;;  %v1430_v2 = vld [vmem:[%s1869_s1 + $0x10] sm:$0xff] (!%p320_p9)   ;;  %vm432_vm0 = vcmask (!%p320_p9), 523264   ;;  %vm651_vm1 = vcmask (!%p320_p9), 64512  }
  0x10   : > { %323 = sbr.rel (%p320_p9) target bundleno = 1949 (0x79d), region = 56  ;;  %1275 = vmatprep.subr.bf16.mxu0 (!%p320_p9), %v1428_v0  ;;  %v1436_v3 = vld [vmem:[%s1871_s3] sm:$0xff] (!%p320_p9)   ;;  %v1437_v4 = vld [vmem:[%s1871_s3 + $0x8] sm:$0xff] (!%p320_p9)   ;;  %v1431_v6 = vld [vmem:[%s1869_s1 + $0x18] sm:$0xff] (!%p320_p9)   ;;  %v1541_v59 = vmov (!%p320_p9), 0.0   ;;  %vm826_vm2 = vcmask (!%p320_p9), 1043456  }
  0x11   : > { %1276 = vmatpush3.bf16.msra.mxu0 (!%p320_p9), %v1428_v0  ;;  %1291 = vmatprep.subr.bf16.mxu1 (!%p320_p9), %v1436_v3  ;;  %v1438_v10 = vld [vmem:[%s1871_s3 + $0x10] sm:$0xff] (!%p320_p9)   ;;  %v1439_v11 = vld [vmem:[%s1871_s3 + $0x18] sm:$0xff] (!%p320_p9)   ;;  %v1187_v12 = vld [vmem:[%s1870_s2] ss:$0 sm:$0xff] (!%p320_p9)  ;;  %vm740_vm3 = vcmask (!%p320_p9), 457728   ;;  %s1542_s29 = smov (!%p320_p9), 112  }
  0x12   : > { %1277 = vmatprep.subr.bf16.mxu0 (!%p320_p9), %v1429_v1  ;;  %1292 = vmatpush3.bf16.msra.mxu1 (!%p320_p9), %v1436_v3  ;;  %v1200_v40 = vld [vmem:[%s1872_s4] ss:$0 sm:$0xff] (!%p320_p9)  ;;  %vm1543_vm4 = vmmov (!%p320_p9), 0   ;;  %s970_s21 = sld [smem:[#allocation2]] (!%p320_p9)  ;;  %s1544_s27 = smov (!%p320_p9), 64  }
  0x13   : > { %1293 = vmatprep.subr.bf16.mxu1 (!%p320_p9), %v1437_v4  ;;  %s352_s12 = sand.u32 (!%p320_p9), 1, %s1530_s16   ;;  %s1224_s19 = sshll.u32 (!%p320_p9), %s1625_s5, 4 }
  0x15   : > { %1278 = vmatpush3.bf16.msra.mxu0 (!%p320_p9), %v1429_v1 }
  0x16   : > { %1279 = vmatprep.subr.bf16.mxu0 (!%p320_p9), %v1430_v2  ;;  %1294 = vmatpush3.bf16.msra.mxu1 (!%p320_p9), %v1437_v4 }
  0x17   : > { %s1660_s30 = scalar_select %p359_p10, %s1625_s5, 1  ;;  %1295 = vmatprep.subr.bf16.mxu1 %v1438_v10 }
  0x19   : > { %s1383_s13 = smul.u32 28, %s1660_s30  ;;  %1280 = vmatpush3.bf16.msra.mxu0 %v1430_v2  ;;  %s366_s11 = scalar_lea.vmem %s1878_s10, %s1660_s30 }
  0x1a   : > { %1281 = vmatprep.subr.bf16.mxu0 %v1431_v6  ;;  %1296 = vmatpush3.bf16.msra.mxu1 %v1438_v10 }
  0x1b   : > { %s363_s28 = scalar_lea.vmem %s1868_s0, %s1383_s13  ;;  %1297 = vmatprep.subr.bf16.mxu1 %v1439_v11 }
  0x1c   : > { %v1432_v5 = vld [vmem:[%s363_s28] sm:$0xff]   ;;  %v1433_v7 = vld [vmem:[%s363_s28 + $0x8] sm:$0xff]   ;;  %v1434_v8 = vld [vmem:[%s363_s28 + $0x10] sm:$0xff]  }
  0x1d   : > { %1283 = vmatprep.mubr.msk.bf16.mxu0 %vm432_vm0, %v1432_v5  ;;  %1282 = vmatpush3.bf16.msra.mxu0 %v1431_v6  ;;  %v1435_v9 = vld [vmem:[%s363_s28 + $0x18] ss:$0 sps:$4 sm:$0xff]   ;;  %s1540_s28 = smov 120  }
  0x1e   : > { %1298 = vmatpush3.bf16.msra.mxu1 %v1439_v11 }
  0x1f   : > { %1323 = vmatprep.subr.bf16.mxu1 %v1541_v59 }
  0x20   : > { %1284 = vmatmul.mubr.msk.bf16.vlgmr.msra.gmra.mrb[0].mxu0 %vm432_vm0, %v1433_v7 }
  0x21   : > { %1287 = vmatprep.mubr.msk.bf16.mxu0 %vm432_vm0, %v1434_v8 }
  0x28   : > { %1288 = vmatmul.mubr.msk.bf16.gmra.mrb[4].mxu0 %vm432_vm0, %v1435_v9 }
  0xf3   : > { %v1285_v13 = vpop.f32.mrb[0].mxu0 }
  0xf4   : > { %v488_v14 = vadd.f32 %v1285_v13, %v1187_v12  ;;  %v479_v15 = vpop.f32.mrb[1].mxu0 }
  0xf5   : > { %v480_v16 = vadd.f32 %v1187_v12, %v479_v15  ;;  %v1286_v17 = vpop.f32.mrb[2].mxu0 }
  0xf6   : > { %v491_v18 = vadd.f32 %v1286_v17, %v1187_v12  ;;  %v482_v19 = vpop.f32.mrb[3].mxu0  ;;  %v511_v21 = vmax.f32 %v488_v14, 0.0 }
  0xf7   : > { %v483_v20 = vadd.f32 %v1187_v12, %v482_v19  ;;  %v509_v23 = vmax.f32 %v480_v16, 0.0 }
  0xf8   : > { %v512_v22 = vmax.f32 %v491_v18, 0.0 }
  0xf9   : > { %v510_v24 = vmax.f32 %v483_v20, 0.0 }
  0xfa   : > { %v1691_v25 = vpack.c.bf16 %v512_v22, %v511_v21 }
  0xfb   : > { %v1289_v26 = vpop.f32.mrb[4].mxu0  ;;  %v1693_v27 = vpack.c.bf16 %v510_v24, %v509_v23 }
  0xfc   : > { %v504_v28 = vadd.f32 %v1289_v26, %v1187_v12  ;;  %v495_v29 = vpop.f32.mrb[5].mxu0 }
  0xfd   : > { %v496_v30 = vadd.f32 %v1187_v12, %v495_v29  ;;  %v1290_v31 = vpop.f32.mrb[6].mxu0  ;;  %1299 = vmatprep.mubr.msk.bf16.mxu1 %vm432_vm0, %v1693_v27 }
  0xfe   : > { %v515_v32 = vmax.f32 %v504_v28, 0.0  ;;  %v498_v33 = vpop.f32.mrb[7].mxu0  ;;  %1300 = vmatmul.mubr.msk.bf16.vlgmr.msra.gmra.mrb[0].mxu1 %vm432_vm0, %v1691_v25 }
  0xff   : > { %v513_v34 = vmax.f32 %v496_v30, 0.0  ;;  %v499_v35 = vadd.f32 %v1187_v12, %v498_v33 }
 0x100   : > { %v519_v37 = vpack.c.bf16 %v515_v32, %v515_v32 }
 0x101   : > { %v514_v36 = vmax.f32 %v499_v35, 0.0 }
 0x102   : > { %v928_v4 = vsel %vm826_vm2, %v519_v37, 0 }
 0x103   : > { %v518_v38 = vpack.c.bf16 %v514_v36, %v513_v34 }
 0x105   : > { %1303 = vmatprep.mubr.msk.bf16.mxu1 %vm432_vm0, %v518_v38 }
 0x106   : > { %1304 = vmatmul.mubr.msk.bf16.gmra.mrb[4].mxu1 %vm432_vm0, %v519_v37 }
 0x107   : > { %1331 = vmatprep.mubr.msk.bf16.mxu1 %vm1543_vm4, %v1541_v59 }
 0x1d1   : > { %v1301_v39 = vpop.f32.mrb[0].mxu1 }
 0x1d2   : > { %v605_v41 = vpop.f32.mrb[1].mxu1  ;;  %v614_v43 = vadd.f32 %v1301_v39, %v1200_v40 }
 0x1d3   : > { %v1302_v42 = vpop.f32.mrb[2].mxu1  ;;  %v606_v46 = vadd.f32 %v1200_v40, %v605_v41 }
 0x1d4   : > { %v617_v44 = vadd.f32 %v1302_v42, %v1200_v40  ;;  %v608_v45 = vpop.f32.mrb[3].mxu1 }
 0x1d5   : > { %v609_v47 = vadd.f32 %v1200_v40, %v608_v45 }
 0x1d6   : > { %v1704_v48 = vpack.c.bf16 %v617_v44, %v614_v43 }
 0x1d7   : > { %v1706_v49 = vpack.c.bf16 %v609_v47, %v606_v46 }
 0x1d9   : > { %v1305_v50 = vpop.f32.mrb[4].mxu1  ;;  %643 = vrot.lane.b32.xlu0 %v1706_v49, %s1540_s28  ;;  %1315 = vmatprep.mubr.msk.bf16.mxu0 %vm651_vm1, %v1706_v49 }
 0x1da   : > { %v621_v51 = vpop.f32.mrb[5].mxu1  ;;  %v630_v56 = vadd.f32 %v1305_v50, %v1200_v40 }
 0x1db   : > { %v622_v52 = vadd.f32 %v1200_v40, %v621_v51  ;;  %v1306_v53 = vpop.f32.mrb[6].mxu1 }
 0x1dc   : > { %v624_v54 = vpop.f32.mrb[7].mxu1  ;;  %v1715_v58 = vpack.c.bf16 %v630_v56, %v630_v56 }
 0x1dd   : > { %v625_v55 = vadd.f32 %v1200_v40, %v624_v54  ;;  %645 = vrot.lane.b32.xlu0 %v1704_v48, %s1540_s28 }
 0x1df   : > { %v1712_v57 = vpack.c.bf16 %v625_v55, %v622_v52 }
 0x1e1   : > { %647 = vrot.lane.b32.xlu1 %v1712_v57, %s1540_s28 }
 0x1e5   : > { %649 = vrot.lane.b32.xlu1 %v1715_v58, %s1540_s28  ;;  %s1090_s28 = scalar_lea.sflag [#allocation4], %s352_s12 }
 0x24b   : > { %v644_v60 = vpop.permute.xlu0 %643 }
 0x24c   : > { %v665_v61 = vsel %vm651_vm1, %v644_v60, 0  ;;  %1379 = vmatprep.subr.msk.bf16.mxu0 %vm651_vm1, %v644_v60  ;;  %v818_v60 = vld [vmem:[%s1874_s6] sm:$0x1] }
 0x24d   : > { %1308 = vmatpush3.bf16.xpose.msra.mxu0 %v665_v61 }
 0x24f   : > { %v646_v62 = vpop.permute.xlu0 %645 }
 0x250   : > { %1380 = vmatprep.subr.msk.bf16.mxu0 %vm651_vm1, %v646_v62  ;;  %v668_v63 = vsel %vm651_vm1, %v646_v62, 0 }
 0x253   : > { %v648_v0 = vpop.permute.xlu1 %647 }
 0x254   : > { %v671_v1 = vsel %vm651_vm1, %v648_v0, 0 }
 0x255   : > { %1310 = vmatpush3.bf16.xpose.msra.mxu0 %v668_v63 }
 0x256   : > { %1381 = vmatprep.subr.msk.bf16.mxu0 %vm651_vm1, %v648_v0 }
 0x257   : > { %v650_v2 = vpop.permute.xlu1 %649 }
 0x258   : > { %v674_v3 = vsel %vm651_vm1, %v650_v2, 0 }
 0x25d   : > { %1312 = vmatpush3.bf16.xpose.msra.mxu0 %v671_v1 }
 0x25e   : > { %1382 = vmatprep.subr.msk.bf16.mxu0 %vm651_vm1, %v650_v2 }
 0x265   : > { %1314 = vmatpush3.bf16.xpose.msra.mxu0 %v674_v3 }
 0x266   : > { %1347 = vmatprep.subr.bf16.mxu0 %v1541_v59 }
 0x26c   : > { %1316 = vmatmul.mubr.msk.bf16.vlgmr.msra.gmra.mrb[8].mxu0 %vm651_vm1, %v1704_v48 }
 0x26d   : > { %1319 = vmatprep.mubr.msk.bf16.mxu0 %vm651_vm1, %v1712_v57  ;;  %1348 = vmatpush3.bf16.msra.mxu0 %v1693_v27 }
 0x26e   : > { %1349 = vmatprep.subr.bf16.mxu0 %v1541_v59 }
 0x271   : > { %1350 = vmatpush3.bf16.msra.mxu0 %v1691_v25 }
 0x272   : > { %1351 = vmatprep.subr.bf16.mxu0 %v1541_v59 }
 0x274   : > { %1320 = vmatmul.mubr.msk.bf16.gmra.mrb[12].mxu0 %vm651_vm1, %v1715_v58 }
 0x275   : > { %1352 = vmatpush3.bf16.msra.mxu0 %v518_v38  ;;  %1355 = vmatprep.mubr.msk.bf16.mxu0 %vm1543_vm4, %v1541_v59 }
 0x276   : > { %1353 = vmatprep.subr.bf16.mxu0 %v1541_v59 }
 0x279   : > { %1354 = vmatpush3.bf16.msra.mxu0 %v928_v4 }
 0x27c   : > { %1356 = vmatmul.mubr.msk.bf16.vlgmr.msra.gmra.mrb[16].mxu0 %vm740_vm3, %v818_v60 }
 0x33f   : > { %v1317_v5 = vpop.f32.mrb[8].mxu0 }
 0x340   : > { %v710_v6 = vpop.f32.mrb[9].mxu0  ;;  %v747_v11 = vsel %vm740_vm3, %v1317_v5, -inf }
 0x341   : > { %v1318_v7 = vpop.f32.mrb[10].mxu0  ;;  %v741_v8 = vsel %vm740_vm3, %v710_v6, -inf }
 0x342   : > { %742 = vmax.xlane.f32.xlu0 %v741_v8  ;;  %v713_v9 = vpop.f32.mrb[11].mxu0  ;;  %v750_v15 = vsel %vm740_vm3, %v1318_v7, -inf }
 0x343   : > { %v744_v10 = vsel %vm740_vm3, %v713_v9, -inf }
 0x344   : > { %745 = vmax.xlane.f32.xlu1 %v744_v10 }
 0x346   : > { %748 = vmax.xlane.f32.xlu0 %v747_v11 }
 0x347   : > { %v1321_v12 = vpop.f32.mrb[12].mxu0 }
 0x348   : > { %v726_v13 = vpop.f32.mrb[13].mxu0  ;;  %v759_v18 = vsel %vm740_vm3, %v1321_v12, -inf }
 0x349   : > { %v1322_v14 = vpop.f32.mrb[14].mxu0  ;;  %v753_v16 = vsel %vm740_vm3, %v726_v13, -inf }
 0x34a   : > { %751 = vmax.xlane.f32.xlu0 %v750_v15  ;;  %754 = vmax.xlane.f32.xlu1 %v753_v16  ;;  %v729_v17 = vpop.f32.mrb[15].mxu0 }
 0x34b   : > { %v756_v19 = vsel %vm740_vm3, %v729_v17, -inf }
 0x34e   : > { %760 = vmax.xlane.f32.xlu1 %v759_v18  ;;  %757 = vmax.xlane.f32.xlu0 %v756_v19 }
 0x3cf   : > { %v743_v20 = vpop.xlane.xlu0 %742 }
 0x3d0   : > { %v762_v21 = vsub.f32 %v710_v6, %v743_v20 }
 0x3d1   : > { %v746_v22 = vpop.xlane.xlu1 %745 }
 0x3d2   : > { %v769_v23 = vmul.f32 1.442695, %v762_v21  ;;  %v763_v24 = vsub.f32 %v713_v9, %v746_v22 }
 0x3d3   : > { %v749_v25 = vpop.xlane.xlu0 %748 }
 0x3d4   : > { %1448 = vpow2.f32 %v769_v23  ;;  %v771_v26 = vmul.f32 1.442695, %v763_v24  ;;  %v764_v27 = vsub.f32 %v1317_v5, %v749_v25 }
 0x3d6   : > { %1450 = vpow2.f32 %v771_v26  ;;  %v773_v28 = vmul.f32 1.442695, %v764_v27 }
 0x3d7   : > { %v752_v29 = vpop.xlane.xlu0 %751  ;;  %v755_v30 = vpop.xlane.xlu1 %754 }
 0x3d8   : > { %1452 = vpow2.f32 %v773_v28  ;;  %v765_v31 = vsub.f32 %v1318_v7, %v752_v29  ;;  %v766_v32 = vsub.f32 %v726_v13, %v755_v30  ;;  %v964_v29 = vpop.f32.mrb[16].mxu0 }
 0x3d9   : > { %v1357_v30 = vpop.f32.mrb[17].mxu0 }
 0x3da   : > { %v775_v33 = vmul.f32 1.442695, %v765_v31  ;;  %v777_v34 = vmul.f32 1.442695, %v766_v32  ;;  %v967_v31 = vpop.f32.mrb[18].mxu0 }
 0x3db   : > { %v761_v35 = vpop.xlane.xlu1 %760  ;;  %v758_v36 = vpop.xlane.xlu0 %757 }
 0x3dc   : > { %1454 = vpow2.f32 %v775_v33  ;;  %v768_v37 = vsub.f32 %v1321_v12, %v761_v35  ;;  %v767_v38 = vsub.f32 %v729_v17, %v758_v36  ;;  %v1358_v32 = vpop.f32.mrb[19].mxu0  ;;  %v1440_v33 = vld [vmem:[%s1875_s7] sm:$0xff]   ;;  %v1442_v35 = vld [vmem:[%s1875_s7 + $0x10] sm:$0xff]   ;;  %v1443_v36 = vld [vmem:[%s1875_s7 + $0x18] sm:$0xff]  }
 0x3dd   : > { %1456 = vpow2.f32 %v777_v34  ;;  %v1441_v34 = vld [vmem:[%s1875_s7 + $0x8] sm:$0xff]  }
 0x3de   : > { %v1449_v39 = vpop.eup %1448  ;;  %v781_v40 = vmul.f32 1.442695, %v768_v37  ;;  %v779_v41 = vmul.f32 1.442695, %v767_v38  ;;  %v1444_v37 = vld [vmem:[%s1875_s7 + $0x20] sm:$0xff]   ;;  %v1445_v38 = vld [vmem:[%s1875_s7 + $0x28] sm:$0xff]  }
 0x3df   : > { %v783_v42 = vsel %vm740_vm3, %v1449_v39, 0.0 }
 0x3e0   : > { %v1451_v43 = vpop.eup %1450  ;;  %1458 = vpow2.f32 %v781_v40  ;;  %784 = vadd.xlane.f32.xlu0 %v783_v42  ;;  %v1447_v40 = vld [vmem:[%s1875_s7 + $0x38] sm:$0xff]  }
 0x3e1   : > { %1460 = vpow2.f32 %v779_v41  ;;  %v786_v44 = vsel %vm740_vm3, %v1451_v43, 0.0  ;;  %v971_v41 = vstv %s970_s21  ;;  %s353_s21 = scalar_lea.vmem [#allocation3], %s352_s12 }
 0x3e2   : > { %v1453_v45 = vpop.eup %1452  ;;  %787 = vadd.xlane.f32.xlu1 %v786_v44  ;;  %s1105_s22 = sshll.u32 %s353_s21, 4  ;;  %s1828_s22 = int_to_ptr.vmem [resolvable:$true] %s1105_s22 }
 0x3e3   : > { %v789_v46 = vsel %vm740_vm3, %v1453_v45, 0.0  ;;  %s1476_s5 = scalar_lea.vmem %s1828_s22, 16 }
 0x3e4   : > { %790 = vadd.xlane.f32.xlu0 %v789_v46  ;;  %p1477_p11 = scmp.ne.s32.totalorder %s1828_s22, %s1476_s5 }
 0x3e6   : > { %v1455_v47 = vpop.eup %1454  ;;  %p1478_p12 = pnand %p1477_p11, %p1642_p5 }
 0x3e7   : > { %v1457_v50 = vpop.eup %1456  ;;  %v792_v51 = vsel %vm740_vm3, %v1455_v47, 0.0 }
 0x3e8   : > { %793 = vadd.xlane.f32.xlu1 %v792_v51  ;;  %v795_v52 = vsel %vm740_vm3, %v1457_v50, 0.0  ;;  %p1479_p13 = pneg %p1478_p12 }
 0x3e9   : > { %796 = vadd.xlane.f32.xlu0 %v795_v52 }
 0x3ea   : > { %v1459_v53 = vpop.eup %1458 }
 0x3eb   : > { %v1461_v54 = vpop.eup %1460  ;;  %v801_v55 = vsel %vm740_vm3, %v1459_v53, 0.0 }
 0x3ec   : > { %v798_v56 = vsel %vm740_vm3, %v1461_v54, 0.0 }
 0x3ed   : > { %802 = vadd.xlane.f32.xlu0 %v801_v55  ;;  %799 = vadd.xlane.f32.xlu1 %v798_v56 }
 0x3fe   : > { %871 = vrot.lane.b32.xlu1 %v1706_v49, %s1542_s29 }
 0x402   : > { %875 = vrot.lane.b32.xlu1 %v1712_v57, %s1542_s29 }
 0x403   : > { %873 = vrot.lane.b32.xlu0 %v1704_v48, %s1542_s29 }
 0x406   : > { %877 = vrot.lane.b32.xlu1 %v1715_v58, %s1542_s29  ;;  %s1545_s29 = smov [#allocation3]  }
 0x46d   : > { %v785_v49 = vpop.xlane.xlu0 %784 }
 0x46e   : > { %1462 = vrcp.f32 %v785_v49 }
 0x46f   : > { %v788_v57 = vpop.xlane.xlu1 %787 }
 0x470   : > { %1464 = vrcp.f32 %v788_v57 }
 0x471   : > { %v791_v48 = vpop.xlane.xlu0 %790 }
 0x472   : > { %1466 = vrcp.f32 %v791_v48 }
 0x475   : > { %v794_v58 = vpop.xlane.xlu1 %793 }
 0x476   : > { %1468 = vrcp.f32 %v794_v58  ;;  %v797_v61 = vpop.xlane.xlu0 %796 }
 0x477   : > { %1470 = vrcp.f32 %v797_v61 }
 0x478   : > { %v1463_v62 = vpop.eup %1462 }
 0x479   : > { %v811_v2 = vmul.f32 %v1463_v62, %v1449_v39  ;;  %v1446_v39 = vld [vmem:[%s1875_s7 + $0x30] sm:$0xff]  }
 0x47a   : > { %v1465_v63 = vpop.eup %1464  ;;  %v800_v0 = vpop.xlane.xlu1 %799 }
 0x47b   : > { %v803_v1 = vpop.xlane.xlu0 %802  ;;  %1472 = vrcp.f32 %v800_v0  ;;  %v812_v3 = vmul.f32 %v1465_v63, %v1451_v43 }
 0x47c   : > { %1474 = vrcp.f32 %v803_v1  ;;  %v1467_v5 = vpop.eup %1466 }
 0x47d   : > { %v819_v4 = vpack.c.bf16 %v812_v3, %v811_v2  ;;  %v813_v7 = vmul.f32 %v1467_v5, %v1453_v45 }
 0x47e   : > { %v872_v19 = vpop.permute.xlu1 %871 }
 0x47f   : > { %1324 = vmatpush3.bf16.msra.mxu1 %v819_v4  ;;  %v874_v21 = vpop.permute.xlu0 %873 }
 0x480   : > { %v1469_v6 = vpop.eup %1468  ;;  %1325 = vmatprep.subr.bf16.mxu1 %v1541_v59 }
 0x481   : > { %v814_v8 = vmul.f32 %v1469_v6, %v1455_v47  ;;  %v1471_v9 = vpop.eup %1470 }
 0x482   : > { %v815_v13 = vmul.f32 %v1471_v9, %v1457_v50  ;;  %v876_v20 = vpop.permute.xlu1 %875 }
 0x483   : > { %v820_v10 = vpack.c.bf16 %v814_v8, %v813_v7 }
 0x485   : > { %v1473_v11 = vpop.eup %1472  ;;  %1326 = vmatpush3.bf16.msra.mxu1 %v820_v10 }
 0x486   : > { %v1475_v12 = vpop.eup %1474  ;;  %1327 = vmatprep.subr.bf16.mxu1 %v1541_v59  ;;  %v816_v14 = vmul.f32 %v1473_v11, %v1461_v54  ;;  %v878_v22 = vpop.permute.xlu1 %877  ;;  %v999_v54 = vld [vmem:[%s1876_s8] sm:$0x1] }
 0x487   : > { %v817_v15 = vmul.f32 %v1475_v12, %v1459_v53  ;;  %v886_v23 = vsel %vm826_vm2, %v878_v22, 0 }
 0x488   : > { %v821_v16 = vpack.c.bf16 %v816_v14, %v815_v13 }
 0x489   : > { %v822_v17 = vpack.c.bf16 %v817_v15, %v817_v15 }
 0x48a   : > { %1328 = vmatpush3.bf16.msra.mxu1 %v821_v16 }
 0x48b   : > { %1329 = vmatprep.subr.bf16.mxu1 %v1541_v59  ;;  %v828_v18 = vsel %vm826_vm2, %v822_v17, 0 }
 0x48e   : > { %1330 = vmatpush3.bf16.msra.mxu1 %v828_v18 }
 0x48f   : > { %1335 = vmatprep.subr.bf16.mxu1 %v1541_v59 }
 0x491   : > { %1332 = vmatmul.mubr.msk.bf16.vlgmr.msra.gmra.mrb[8].mxu1 %vm740_vm3, %v818_v60 }
 0x492   : > { %1336 = vmatpush3.bf16.msra.mxu1 %v872_v19  ;;  %1343 = vmatprep.mubr.msk.bf16.mxu1 %vm1543_vm4, %v1541_v59 }
 0x493   : > { %1337 = vmatprep.subr.bf16.mxu1 %v1541_v59 }
 0x496   : > { %1338 = vmatpush3.bf16.msra.mxu1 %v874_v21 }
 0x497   : > { %1339 = vmatprep.subr.bf16.mxu1 %v1541_v59 }
 0x49a   : > { %1340 = vmatpush3.bf16.msra.mxu1 %v876_v20 }
 0x49b   : > { %1341 = vmatprep.subr.bf16.mxu1 %v1541_v59 }
 0x49e   : > { %1342 = vmatpush3.bf16.msra.mxu1 %v886_v23 }
 0x49f   : > { %1359 = vmatprep.subr.bf16.mxu1 %v1541_v59 }
 0x564   : > { %v864_v24 = vpop.f32.mrb[8].mxu1 }
 0x565   : > { %v870_v25 = vpack.c.bf16 %v864_v24, %v864_v24  ;;  %v1333_v26 = vpop.f32.mrb[9].mxu1 }
 0x566   : > { %v867_v27 = vpop.f32.mrb[10].mxu1 }
 0x567   : > { %v1334_v28 = vpop.f32.mrb[11].mxu1  ;;  %1344 = vmatmul.mubr.msk.bf16.vlgmr.msra.gmra.mrb[12].mxu1 %vm740_vm3, %v870_v25 }
 0x568   : > { %1375 = vmatprep.mubr.msk.bf16.mxu1 %vm1543_vm4, %v1541_v59  ;;  %1360 = vmatpush3.bf16.msra.mxu1 %v1440_v33 }
 0x569   : > { %1361 = vmatprep.subr.bf16.mxu1 %v1541_v59 }
 0x56c   : > { %1362 = vmatpush3.bf16.msra.mxu1 %v1441_v34 }
 0x56d   : > { %1363 = vmatprep.subr.bf16.mxu1 %v1541_v59 }
 0x570   : > { %1364 = vmatpush3.bf16.msra.mxu1 %v1442_v35 }
 0x571   : > { %1365 = vmatprep.subr.bf16.mxu1 %v1541_v59 }
 0x574   : > { %1366 = vmatpush3.bf16.msra.mxu1 %v1443_v36 }
 0x575   : > { %1367 = vmatprep.subr.bf16.mxu1 %v1541_v59 }
 0x578   : > { %1368 = vmatpush3.bf16.msra.mxu1 %v1444_v37 }
 0x579   : > { %1369 = vmatprep.subr.bf16.mxu1 %v1541_v59 }
 0x57c   : > { %1370 = vmatpush3.bf16.msra.mxu1 %v1445_v38 }
 0x57d   : > { %1371 = vmatprep.subr.bf16.mxu1 %v1541_v59 }
 0x580   : > { %1372 = vmatpush3.bf16.msra.mxu1 %v1446_v39 }
 0x581   : > { %1373 = vmatprep.subr.bf16.mxu1 %v1541_v59 }
 0x584   : > { %1374 = vmatpush3.bf16.msra.mxu1 %v1447_v40 }
 0x63a   : > { %v922_v42 = vpop.f32.mrb[12].mxu1 }
 0x63b   : > { %v972_v43 = vmul.f32 %v971_v41, %v922_v42  ;;  %v1345_v44 = vpop.f32.mrb[13].mxu1 }
 0x63c   : > { %v925_v45 = vpop.f32.mrb[14].mxu1 }
 0x63d   : > { %v973_v46 = vadd.f32 %v972_v43, %v964_v29  ;;  %v1346_v47 = vpop.f32.mrb[15].mxu1 }
 0x63f   : > { %v974_v50 = vmul.f32 0.020408163, %v973_v46 }
 0x641   : > { %v976_v51 = vrot.slane %v974_v50, 1 }
 0x643   : > { %977 = vrot.lane.b32.xlu0 %v976_v51, %s1544_s27  ;;  %s1826_s27 = scalar_lea.hbm %s1877_s9, %s1224_s19 }
 0x6b5   : > { %v978_v59 = vpop.permute.xlu0 %977 }
 0x6b6   : > { %v980_v52 = vsel %vm432_vm0, %v974_v50, %v978_v59 }
 0x6b7   : > { %981 = vst [vmem:[%s366_s11] sm:$0x1] %v980_v52  ;;  %v982_v53 = vpack.c.bf16 %v980_v52, %v980_v52  ;;  %s1480_s11 = sshll.u32 %s1545_s29, 4  ;;  %s1481_s11 = int_to_ptr.vmem [resolvable:$false] %s1480_s11 }
 0x6b8   : > { %s1482_s13 = scalar_lea.vmem %s1481_s11, 32  ;;  %p1483_p0 = scmp.lt.s32.totalorder %s1828_s22, %s1481_s11 }
 0x6b9   : > { %1376 = vmatmul.mubr.bf16.vlgmr.msra.gmra.mrb[16].mxu1 %v982_v53  ;;  %p1484_p1 = scmp.lt.s32.totalorder %s1482_s13, %s1476_s5 }
 0x6bb   : > { %p1485_p2 = por %p1484_p1, %p1483_p0 }
 0x6bd   : > { %p1486_p3 = pnand %p1485_p2, %p1479_p13 }
 0x78c   : > { %v1082_v55 = vpop.f32.mrb[16].mxu1 }
 0x78d   : > { %v1083_v56 = vadd.f32 %v1082_v55, %v999_v54  ;;  %v1377_v60 = vpop.f32.mrb[17].mxu1 }
 0x78e   : > { %v1085_v49 = vpop.f32.mrb[18].mxu1 }
 0x78f   : > { %1088 = vst [vmem:[%s353_s21] sm:$0x1] %v1083_v56  ;;  %v1378_v57 = vpop.f32.mrb[19].mxu1 }
 0x790   : > { %1489 = shalt.err (!%p1486_p3)
}
 0x791   : > { %s1490_s12 = scalar_lea.hbm %s1826_s27, 16  ;;  %s1494_s21 = scalar_lea.hbm %s1877_s9, 32 }
 0x792   : > { %p1491_p4 = scmp.ne.s32.totalorder %s1826_s27, %s1490_s12  ;;  %p1495_p9 = scmp.lt.u32.totalorder %s1826_s27, %s1877_s9 }
 0x793   : > { %p1496_p10 = scmp.lt.u32.totalorder %s1494_s21, %s1490_s12  ;;  %p1498_p12 = scmp.lt.u32.totalorder %s1490_s12, %s1826_s27 }
 0x794   : > { %p1492_p7 = pnand %p1491_p4, %p1642_p5 }
 0x795   : > { %p1497_p11 = por %p1496_p10, %p1495_p9 }
 0x796   : > { %p1493_p8 = pneg %p1492_p7 }
 0x797   : > { %p1499_p13 = por %p1498_p12, %p1497_p11 }
 0x799   : > { %p1500_p0 = pnand %p1499_p13, %p1493_p8 }
 0x79b   : > { %1503 = shalt.err (!%p1500_p0)
}
 0x79c   : > { %1384 = dma.vmem_to_hbm [thread:$0]  (%p1642_p5), %s1828_s22, 16, %s1826_s27, %s1090_s28  }
 0x79d PF: > { %p1390_p1 = scmp.ge.s32.totalorder %s1538_s18, 2  ;;  %s1120_s5 = sand.u32 1, %s1526_s15  }
 0x79e   : > { %s1121_s29 = scalar_lea.sflag [#allocation4], %s1120_s5 }
 0x79f   : > { %p1387_p2 = pnand %p1390_p1, %p1646_p6 }
 0x7a1   : > { %1521 = dma.done.wait (!%p1387_p2), %s1121_s29, 16  }
 0x7a2   : > { %1523 = vsyncadd (!%p1387_p2), %s1121_s29, 4294967280  ;;  %p22_p3 = scmp.ge.s32.totalorder %s1629_s20, 4   ;;  %s1881_s15 = smov %s1530_s16 }
 0x7a3   : > { %s1882_s16 = smov %s1534_s17  ;;  %s1883_s17 = smov %s1640_s23 }
 0x7a4   : > { %s1884_s18 = smov %s1629_s20  ;;  %24 = sbr.rel (!%p22_p3) target bundleno = 5 (0x5), region = 103 }
 0x7ab   :  { %1131 = vsyncpa [#allocation4], 1 }
 0x7ac   :  { %1133 = vsyncpa [#allocation4 + $0x1], 1 }

</bundles_post_ra>
